<compile_context>
chip_gen: v7x
topology: tpu7x:2x2x1
jax: 0.10.0
libtpu: 0.0.40
codegen_flags: <defaults>
</compile_context>

<pallas_src>
import jax
import jax.numpy as jnp
from jax.experimental import pallas as pl
from jax.experimental.pallas import tpu as pltpu


def tower_kernel(x_ref, w1_ref, b1_ref, w2_ref, b2_ref, out_ref):
    # fc1 + ReLU + fc2 on one batch tile, all in VMEM (MXU for dots, VPU epilogue).
    x = x_ref[...]                                       # (TB, D_in)
    h = jnp.dot(x, w1_ref[...],
                preferred_element_type=jnp.float32)      # (TB, H), f32 accum
    h = jnp.maximum(h + b1_ref[...], 0.0)                # bias + ReLU in f32
    o = jnp.dot(h, w2_ref[...],
                preferred_element_type=jnp.float32)      # (TB, E)
    out_ref[...] = (o + b2_ref[...]).astype(out_ref.dtype)


def tower_forward(x, w1, b1, w2, b2, *, block_b=2048):
    """x: (B, D_in), w1: (D_in, H), b1: (1, H), w2: (H, E), b2: (1, E) -> (B, E).

    To run the big x stream in bf16 on v5e/v6e/v7x, pass x (and optionally w1)
    already cast by the upstream producer; accumulation stays f32 in-kernel.
    """
    B, D_in = x.shape
    H = w1.shape[1]
    E = w2.shape[1]
    out_dtype = x.dtype

    # Biases must be 2-D to match their BlockSpecs.
    assert b1.ndim == 2 and b1.shape == (1, H), "b1 must have shape (1, H)"
    assert b2.ndim == 2 and b2.shape == (1, E), "b2 must have shape (1, E)"
    assert w2.shape[0] == H and w1.shape[0] == D_in

    # ---- batch tiling ----
    TB = min(block_b, B)
    # Ensure enough grid steps (>= 8) for megacore sharding on v7x when the
    # batch is big enough; on v5e/v6e this only costs a little per-step overhead.
    min_steps = 8
    if B >= min_steps * 8:
        TB = min(TB, max(8, (B // min_steps) // 8 * 8))
    # TB must be a multiple of 8 sublanes unless it covers the full batch.
    if TB != B and TB % 8 != 0:
        TB = max(8, (TB // 8) * 8)
    grid = (pl.cdiv(B, TB),)

    itemsize = jnp.dtype(x.dtype).itemsize
    weight_bytes = (w1.size * jnp.dtype(w1.dtype).itemsize
                    + b1.size * jnp.dtype(b1.dtype).itemsize
                    + w2.size * jnp.dtype(w2.dtype).itemsize
                    + b2.size * jnp.dtype(b2.dtype).itemsize)
    cost = pl.CostEstimate(
        flops=2 * B * (D_in * H + H * E),
        transcendentals=0,
        bytes_accessed=B * D_in * itemsize
        + B * E * jnp.dtype(out_dtype).itemsize
        + weight_bytes,
    )

    out = pl.pallas_call(
        tower_kernel,
        out_shape=jax.ShapeDtypeStruct((B, E), out_dtype),
        grid_spec=pl.GridSpec(
            grid=grid,
            in_specs=[
                # x: streamed per batch tile (double-buffered by Pallas).
                pl.BlockSpec((TB, D_in), lambda i: (i, 0)),
                # Weights/biases: full-array blocks, same block index every
                # step -> stay resident in VMEM, not re-fetched per grid step.
                pl.BlockSpec((D_in, H), lambda i: (0, 0)),
                pl.BlockSpec((1, H), lambda i: (0, 0)),
                pl.BlockSpec((H, E), lambda i: (0, 0)),
                pl.BlockSpec((1, E), lambda i: (0, 0)),
            ],
            out_specs=pl.BlockSpec((TB, E), lambda i: (i, 0)),
        ),
        compiler_params=pltpu.CompilerParams(
            dimension_semantics=("parallel",)),
        cost_estimate=cost,
    )(x, w1, b1, w2, b2)

    return out


def tower_reference(x, w1, b1, w2, b2):
    h = jnp.maximum(x @ w1 + b1, 0.0)
    return h @ w2 + b2


if __name__ == "__main__":
    # Small shapes consistent with the module: hidden_dim=32, num_experts=4, batch=8.
    batch = 8
    hidden_dim = 32
    num_experts = 4
    d_in = hidden_dim * num_experts  # 128

    key = jax.random.PRNGKey(0)
    kx, kw1, kb1, kw2, kb2 = jax.random.split(key, 5)

    x = jax.random.normal(kx, (batch, d_in), dtype=jnp.float32)

    # Deterministic parameter init (mimic nn.Linear uniform(-1/sqrt(fan_in), 1/sqrt(fan_in))).
    lim1 = 1.0 / jnp.sqrt(jnp.float32(d_in))
    w1 = jax.random.uniform(kw1, (d_in, hidden_dim), jnp.float32, -lim1, lim1)
    b1 = jax.random.uniform(kb1, (1, hidden_dim), jnp.float32, -lim1, lim1)

    lim2 = 1.0 / jnp.sqrt(jnp.float32(hidden_dim))
    w2 = jax.random.uniform(kw2, (hidden_dim, num_experts), jnp.float32, -lim2, lim2)
    b2 = jax.random.uniform(kb2, (1, num_experts), jnp.float32, -lim2, lim2)

    # 1) Small-batch run (grid of 1 tile).
    out = tower_forward(x, w1, b1, w2, b2)
    out = jax.block_until_ready(out)
    ref = tower_reference(x, w1, b1, w2, b2)
    assert out.shape == (batch, num_experts)
    assert jnp.allclose(out, ref, atol=1e-5, rtol=1e-5), "mismatch vs JAX reference (small batch)"

    # 2) Exercise the batch-tiled, multi-step grid (>= 8 steps) with a modest batch.
    batch2 = 64
    x2 = jax.random.normal(jax.random.PRNGKey(1), (batch2, d_in), dtype=jnp.float32)
    out2 = tower_forward(x2, w1, b1, w2, b2, block_b=16)
    out2 = jax.block_until_ready(out2)
    ref2 = tower_reference(x2, w1, b1, w2, b2)
    assert out2.shape == (batch2, num_experts)
    assert jnp.allclose(out2, ref2, atol=1e-5, rtol=1e-5), "mismatch vs JAX reference (tiled batch)"

    print("KERNEL_OK")
</pallas_src>

<mosaic_0001>
module attributes {stable_mosaic.version = 11 : i64} {
  func.func @tower_kernel(%arg0: i32, %arg1: memref<8x128xf32, #tpu.memory_space<vmem>>, %arg2: memref<128x32xf32, #tpu.memory_space<vmem>>, %arg3: memref<1x32xf32, #tpu.memory_space<vmem>>, %arg4: memref<32x4xf32, #tpu.memory_space<vmem>>, %arg5: memref<1x4xf32, #tpu.memory_space<vmem>>, %arg6: memref<8x4xf32, #tpu.memory_space<vmem>>) attributes {dimension_semantics = [#tpu.dimension_semantics<parallel>], iteration_bounds = array<i64: 1>, scalar_prefetch = 0 : i64, scratch_operands = 0 : i64, tpu.core_type = #tpu.core_type<tc>, window_params = [{transform_indices = @transform_0, window_bounds = array<i64: 8, 128>}, {pipeline_mode = #tpu.pipeline_mode<synchronous>, transform_indices = @transform_1, window_bounds = array<i64: 128, 32>}, {pipeline_mode = #tpu.pipeline_mode<synchronous>, transform_indices = @transform_2, window_bounds = array<i64: 1, 32>}, {pipeline_mode = #tpu.pipeline_mode<synchronous>, transform_indices = @transform_3, window_bounds = array<i64: 32, 4>}, {pipeline_mode = #tpu.pipeline_mode<synchronous>, transform_indices = @transform_4, window_bounds = array<i64: 1, 4>}, {transform_indices = @transform_5, window_bounds = array<i64: 8, 4>}]} {
    %c0 = arith.constant 0 : index
    %c0_0 = arith.constant 0 : index
    %0 = vector.load %arg1[%c0, %c0_0] : memref<8x128xf32, #tpu.memory_space<vmem>>, vector<8x128xf32>
    %c0_1 = arith.constant 0 : index
    %c0_2 = arith.constant 0 : index
    %1 = vector.load %arg2[%c0_1, %c0_2] : memref<128x32xf32, #tpu.memory_space<vmem>>, vector<128x32xf32>
    %cst = arith.constant dense<0.000000e+00> : vector<8x32xf32>
    %2 = tpu.matmul %0, %1, %cst {dimension_numbers = #tpu.dot_dimension_numbers<[1], [0], [0], [1], [0, 0, 1, 1], [], []>} : vector<8x128xf32>, vector<128x32xf32>, vector<8x32xf32> -> vector<8x32xf32>
    %c0_3 = arith.constant 0 : index
    %c0_4 = arith.constant 0 : index
    %3 = vector.load %arg3[%c0_3, %c0_4] : memref<1x32xf32, #tpu.memory_space<vmem>>, vector<1x32xf32>
    %4 = vector.broadcast %3 : vector<1x32xf32> to vector<8x32xf32>
    %5 = arith.addf %2, %4 : vector<8x32xf32>
    %cst_5 = arith.constant 0.000000e+00 : f32
    %6 = vector.broadcast %cst_5 : f32 to vector<8x32xf32>
    %7 = arith.maximumf %5, %6 : vector<8x32xf32>
    %c0_6 = arith.constant 0 : index
    %c0_7 = arith.constant 0 : index
    %8 = vector.load %arg4[%c0_6, %c0_7] : memref<32x4xf32, #tpu.memory_space<vmem>>, vector<32x4xf32>
    %cst_8 = arith.constant dense<0.000000e+00> : vector<8x4xf32>
    %9 = tpu.matmul %7, %8, %cst_8 {dimension_numbers = #tpu.dot_dimension_numbers<[1], [0], [0], [1], [0, 0, 1, 1], [], []>} : vector<8x32xf32>, vector<32x4xf32>, vector<8x4xf32> -> vector<8x4xf32>
    %c0_9 = arith.constant 0 : index
    %c0_10 = arith.constant 0 : index
    %10 = vector.load %arg5[%c0_9, %c0_10] : memref<1x4xf32, #tpu.memory_space<vmem>>, vector<1x4xf32>
    %11 = vector.broadcast %10 : vector<1x4xf32> to vector<8x4xf32>
    %12 = arith.addf %9, %11 : vector<8x4xf32>
    %c0_11 = arith.constant 0 : index
    %c0_12 = arith.constant 0 : index
    %13 = vector.load %arg6[%c0_11, %c0_12] : memref<8x4xf32, #tpu.memory_space<vmem>>, vector<8x4xf32>
    tpu.vector_store %arg6[%c0_11, %c0_12], %12 {strides = array<i32>} : memref<8x4xf32, #tpu.memory_space<vmem>>, vector<8x4xf32>,
    return
  }
  func.func @transform_0(%arg0: i32) -> (i32, i32) {
    %c0_i32 = arith.constant 0 : i32
    %c0_i32_0 = arith.constant 0 : i32
    return %arg0, %c0_i32 : i32, i32
  }
  func.func @transform_1(%arg0: i32) -> (i32, i32) {
    %c0_i32 = arith.constant 0 : i32
    %c0_i32_0 = arith.constant 0 : i32
    %c0_i32_1 = arith.constant 0 : i32
    return %c0_i32, %c0_i32_0 : i32, i32
  }
  func.func @transform_2(%arg0: i32) -> (i32, i32) {
    %c0_i32 = arith.constant 0 : i32
    %c0_i32_0 = arith.constant 0 : i32
    %c0_i32_1 = arith.constant 0 : i32
    return %c0_i32, %c0_i32_0 : i32, i32
  }
  func.func @transform_3(%arg0: i32) -> (i32, i32) {
    %c0_i32 = arith.constant 0 : i32
    %c0_i32_0 = arith.constant 0 : i32
    %c0_i32_1 = arith.constant 0 : i32
    return %c0_i32, %c0_i32_0 : i32, i32
  }
  func.func @transform_4(%arg0: i32) -> (i32, i32) {
    %c0_i32 = arith.constant 0 : i32
    %c0_i32_0 = arith.constant 0 : i32
    %c0_i32_1 = arith.constant 0 : i32
    return %c0_i32, %c0_i32_0 : i32, i32
  }
  func.func @transform_5(%arg0: i32) -> (i32, i32) {
    %c0_i32 = arith.constant 0 : i32
    %c0_i32_0 = arith.constant 0 : i32
    return %arg0, %c0_i32 : i32, i32
  }
}

</mosaic_0001>

<bundles_post_ra>
// kernel: tpu_custom_call.1
= control target key start
LH: loop header
LB: loop body
LE: loop exit
PB: predicated region body
PF: predicated region fallthrough
CT: control target
= control target key end

     0   :  { %v310_v0 = vmov 0.0|0.0   ;;  %vm311_vm0 = vmmov 0   ;;  %v312_v4 = vmov 0.0   ;;  %vm126_vm1 = vcmask 261120   ;;  %s415_s1 = inlined_call_operand.vmem [shape: f32[128,32], index: 1, kind: input, shape index: {}]   ;;  %s416_s3 = inlined_call_operand.vmem [shape: f32[32,4], index: 3, kind: input, shape index: {}]   ;;  %s417_s0 = inlined_call_operand.vmem [shape: f32[8,128], index: 0, kind: input, shape index: {}]   ;;  %s418_s2 = inlined_call_operand.vmem [shape: f32[1,32], index: 2, kind: input, shape index: {}]   ;;  %s419_s4 = inlined_call_operand.vmem [shape: f32[1,4], index: 4, kind: input, shape index: {}]   ;;  %s420_s5 = inlined_call_operand.vmem [shape: f32[8,4], index: 5, kind: output, shape index: {}]  }
   0x1   :  { %277 = vmatprep.subr.bf16.mxu0 %v310_v0  ;;  %v21_v1 = vld [vmem:[%s415_s1] sm:$0xff]  ;;  %v22_v2 = vld [vmem:[%s415_s1 + $0x8] sm:$0xff]  ;;  %v23_v3 = vld [vmem:[%s415_s1 + $0x10] sm:$0xff]  ;;  %263 = vmatprep.mubr.msk.f32.mxu0 %vm311_vm0, %v312_v4  ;;  %vm200_vm2 = vcmask 31744  }
   0x2   :  { %v278_v5 = vpack.c.bf16 %v22_v2, %v21_v1  ;;  %v24_v6 = vld [vmem:[%s415_s1 + $0x18] sm:$0xff]  ;;  %301 = vmatprep.subr.bf16.mxu1 %v310_v0  ;;  %274 = vmatprep.mubr.msk.f32.mxu1 %vm311_vm0, %v312_v4  ;;  %v25_v8 = vld [vmem:[%s415_s1 + $0x20] sm:$0xff]  ;;  %v26_v9 = vld [vmem:[%s415_s1 + $0x28] sm:$0xff] }
   0x3   :  { %v281_v7 = vpack.c.bf16 %v24_v6, %v23_v3  ;;  %v115_v10 = vld [vmem:[%s416_s3] sm:$0xff]  ;;  %v116_v11 = vld [vmem:[%s416_s3 + $0x8] sm:$0xff]  ;;  %v284_v12 = vpack.c.bf16 %v26_v9, %v25_v8  ;;  %v27_v14 = vld [vmem:[%s415_s1 + $0x30] sm:$0xff] }
   0x4   :  { %279 = vmatpush3.bf16.msra.mxu0 %v278_v5  ;;  %v302_v13 = vpack.c.bf16 %v116_v11, %v115_v10  ;;  %v28_v15 = vld [vmem:[%s415_s1 + $0x38] sm:$0xff]  ;;  %v29_v17 = vld [vmem:[%s415_s1 + $0x40] sm:$0xff]  ;;  %v30_v18 = vld [vmem:[%s415_s1 + $0x48] sm:$0xff] }
   0x5   :  { %280 = vmatprep.subr.bf16.mxu0 %v310_v0  ;;  %v287_v16 = vpack.c.bf16 %v28_v15, %v27_v14  ;;  %v290_v19 = vpack.c.bf16 %v30_v18, %v29_v17  ;;  %v31_v20 = vld [vmem:[%s415_s1 + $0x50] sm:$0xff]  ;;  %v32_v21 = vld [vmem:[%s415_s1 + $0x58] sm:$0xff]  ;;  %v33_v23 = vld [vmem:[%s415_s1 + $0x60] sm:$0xff] }
   0x6   :  { %303 = vmatpush3.bf16.msra.mxu1 %v302_v13  ;;  %v293_v22 = vpack.c.bf16 %v32_v21, %v31_v20  ;;  %v34_v24 = vld [vmem:[%s415_s1 + $0x68] sm:$0xff]  ;;  %v35_v26 = vld [vmem:[%s415_s1 + $0x70] sm:$0xff]  ;;  %v36_v27 = vld [vmem:[%s415_s1 + $0x78] sm:$0xff] }
   0x7   :  { %304 = vmatprep.subr.bf16.mxu1 %v310_v0  ;;  %v296_v25 = vpack.c.bf16 %v34_v24, %v33_v23  ;;  %v299_v28 = vpack.c.bf16 %v36_v27, %v35_v26  ;;  %v20_v29 = vld [vmem:[%s417_s0] sm:$0xff]  ;;  %v117_v30 = vld [vmem:[%s416_s3 + $0x10] sm:$0xff]  ;;  %v118_v31 = vld [vmem:[%s416_s3 + $0x18] sm:$0xff] }
   0x8   :  { %282 = vmatpush3.bf16.msra.mxu0 %v281_v7  ;;  %v305_v32 = vpack.c.bf16 %v118_v31, %v117_v30  ;;  %v206_v33 = vld [vmem:[%s418_s2] ss:$0 sm:$0xff] }
   0x9   :  { %283 = vmatprep.subr.bf16.mxu0 %v310_v0  ;;  %v207_v38 = vld [vmem:[%s419_s4] ss:$0 sm:$0xff] }
   0xa   :  { %306 = vmatpush3.bf16.msra.mxu1 %v305_v32 }
   0xc   :  { %285 = vmatpush3.bf16.msra.mxu0 %v284_v12 }
   0xd   :  { %286 = vmatprep.subr.bf16.mxu0 %v310_v0 }
  0x10   :  { %288 = vmatpush3.bf16.msra.mxu0 %v287_v16 }
  0x11   :  { %289 = vmatprep.subr.bf16.mxu0 %v310_v0 }
  0x14   :  { %291 = vmatpush3.bf16.msra.mxu0 %v290_v19 }
  0x15   :  { %292 = vmatprep.subr.bf16.mxu0 %v310_v0 }
  0x18   :  { %294 = vmatpush3.bf16.msra.mxu0 %v293_v22 }
  0x19   :  { %295 = vmatprep.subr.bf16.mxu0 %v310_v0 }
  0x1c   :  { %297 = vmatpush3.bf16.msra.mxu0 %v296_v25 }
  0x1d   :  { %298 = vmatprep.subr.bf16.mxu0 %v310_v0 }
  0x20   :  { %300 = vmatpush3.bf16.msra.mxu0 %v299_v28 }
  0x23   :  { %264 = vmatmul.mubr.f32.vlgmr.msra.gmra.mrb[0].mxu0 %v20_v29 }
  0xf6   :  { %v110_v34 = vpop.f32.mrb[0].mxu0 }
  0xf7   :  { %v111_v35 = vadd.f32 %v206_v33, %v110_v34  ;;  %v265_v36 = vpop.f32.mrb[1].mxu0 }
  0xf9   :  { %v114_v37 = vmax.f32 %v111_v35, 0.0 }
  0xfb   :  { %275 = vmatmul.mubr.msk.f32.vlgmr.msra.gmra.mrb[0].mxu1 %vm126_vm1, %v114_v37 }
 0x1ce   :  { %v196_v39 = vpop.f32.mrb[0].mxu1 }
 0x1cf   :  { %v197_v40 = vadd.f32 %v207_v38, %v196_v39  ;;  %v276_v41 = vpop.f32.mrb[1].mxu1 }
 0x1d1   :  { %201 = vst.msk [vmem:[%s420_s5] sm:$0xff] %vm200_vm2, %v197_v40 }

</bundles_post_ra>
